<compile_context>
chip_gen: v7x
topology: tpu7x:2x2x1
jax: 0.10.0
libtpu: 0.0.40
codegen_flags: <defaults>
</compile_context>

<pallas_src>
import numpy as np
import jax
import jax.numpy as jnp
from jax.experimental import pallas as pl
from jax.experimental.pallas import tpu as pltpu

BASE_WEIGHT = 0.2
LANES = 128
MAX_TILE_ROWS = 2048   # (2048, 128) f32 tile = 1 MiB per pipeline buffer
NUM_CORE_SPLIT = 2     # megacore split of the reduction (v7x); no-op on 1-TC chips


def _cdiv(a, b):
    return (a + b - 1) // b


def _make_kernel(base_weight, rows, tile_rows):
    def kernel(pred_ref, tgt_ref, out_ref, acc_ref):
        i = pl.program_id(1)            # reduction axis ("arbitrary")
        c = pl.program_id(0)            # core axis ("parallel")

        # Init keys on the reduction axis (NOT the parallel core axis), so each
        # core's sweep starts with a zeroed accumulator.
        @pl.when(i == 0)
        def _init():
            acc_ref[...] = jnp.zeros_like(acc_ref)

        t = tgt_ref[...].astype(jnp.float32)
        p = pred_ref[...].astype(jnp.float32)
        val = (t + base_weight) * jnp.abs(t - p)

        # Mask rows past the true end: ragged last tile, and fully-redundant
        # (index-clamped) tiles on the second core.  Uses the *intended*
        # (unclamped) block index, so clamped tiles contribute exactly 0.
        intended_block = c * pl.num_programs(1) + i
        row_start = intended_block * tile_rows
        row_idx = row_start + jax.lax.broadcasted_iota(jnp.int32, val.shape, 0)
        val = jnp.where(row_idx < rows, val, 0.0)

        # Lane-wide accumulator: cheap sublane reduce per step; the cross-lane
        # collapse happens once, in the wrapper.
        acc_ref[...] += jnp.sum(val, axis=0, keepdims=True)

        @pl.when(i == pl.num_programs(1) - 1)
        def _finalize():
            out_ref[...] = acc_ref[...]

    return kernel


def inten_aware_loss(pred, target, base_weight=BASE_WEIGHT,
                     max_tile_rows=MAX_TILE_ROWS):
    assert pred.shape == target.shape
    n_elem = int(np.prod(pred.shape))

    pred_flat = jnp.reshape(pred, (-1,))
    tgt_flat = jnp.reshape(target, (-1,))

    n_main = (n_elem // LANES) * LANES   # lane-aligned prefix -> Pallas kernel
    rows = n_main // LANES

    # Tiny (<128-element) ragged tail handled with plain jnp (negligible cost).
    if n_main < n_elem:
        t_tail = tgt_flat[n_main:].astype(jnp.float32)
        p_tail = pred_flat[n_main:].astype(jnp.float32)
        tail_sum = jnp.sum((t_tail + base_weight) * jnp.abs(t_tail - p_tail))
    else:
        tail_sum = jnp.float32(0.0)

    if rows == 0:  # fewer than 128 elements: no kernel needed
        return tail_sum / jnp.float32(n_elem)

    # Native dtype, lane-dense view; no pad / upcast copies of the full arrays.
    pred2d = pred_flat[:n_main].reshape(rows, LANES)
    tgt2d = tgt_flat[:n_main].reshape(rows, LANES)

    tile_rows = rows if rows <= max_tile_rows else max_tile_rows
    n_blocks = _cdiv(rows, tile_rows)
    blocks_per_core = _cdiv(n_blocks, NUM_CORE_SPLIT)
    last_block = n_blocks - 1

    def in_index_map(c, i):
        # Clamp so the second core's overhang never indexes past the array;
        # the in-kernel mask zeroes those tiles out.
        return (jnp.minimum(c * blocks_per_core + i, last_block), 0)

    kernel = _make_kernel(float(base_weight), rows, tile_rows)

    in_bytes = jnp.dtype(pred.dtype).itemsize + jnp.dtype(target.dtype).itemsize
    cost = pl.CostEstimate(
        flops=5 * n_main,
        transcendentals=0,
        bytes_accessed=n_main * in_bytes + NUM_CORE_SPLIT * LANES * 4,
    )

    partials = pl.pallas_call(
        kernel,
        out_shape=jax.ShapeDtypeStruct((1, NUM_CORE_SPLIT * LANES), jnp.float32),
        grid_spec=pltpu.PrefetchScalarGridSpec(
            num_scalar_prefetch=0,
            grid=(NUM_CORE_SPLIT, blocks_per_core),
            in_specs=[
                pl.BlockSpec((tile_rows, LANES), in_index_map),
                pl.BlockSpec((tile_rows, LANES), in_index_map),
            ],
            out_specs=pl.BlockSpec((1, LANES), lambda c, i: (0, c)),
            scratch_shapes=[pltpu.VMEM((1, LANES), jnp.float32)],
        ),
        compiler_params=pltpu.CompilerParams(
            dimension_semantics=("parallel", "arbitrary"),
        ),
        cost_estimate=cost,
    )(pred2d, tgt2d)

    total = jnp.sum(partials) + tail_sum
    return total / jnp.float32(n_elem)


def _ref_loss(pred, target, w=BASE_WEIGHT):
    return jnp.mean((target + w) * jnp.abs(target - pred))


if __name__ == "__main__":
    key = jax.random.PRNGKey(0)
    k1, k2, k3, k4 = jax.random.split(key, 4)

    # MS2-like small shapes: (batch, seq, frag_types)
    pred = jax.random.uniform(k1, (2, 8, 36), dtype=jnp.float32)
    target = jax.random.uniform(k2, (2, 8, 36), dtype=jnp.float32)

    loss = inten_aware_loss(pred, target)
    loss = jax.block_until_ready(loss)
    ref = _ref_loss(pred, target)
    assert np.allclose(np.asarray(loss), np.asarray(ref), rtol=1e-5, atol=1e-6), (
        float(loss), float(ref))

    # Second check: force small tiles so the multi-block / ragged-last-tile /
    # two-core-split masking paths are exercised on a still-small input.
    pred2 = jax.random.uniform(k3, (3, 50, 36), dtype=jnp.float32)
    target2 = jax.random.uniform(k4, (3, 50, 36), dtype=jnp.float32)
    loss2 = jax.block_until_ready(
        inten_aware_loss(pred2, target2, max_tile_rows=8))
    ref2 = _ref_loss(pred2, target2)
    assert np.allclose(np.asarray(loss2), np.asarray(ref2), rtol=1e-5, atol=1e-6), (
        float(loss2), float(ref2))

    print("KERNEL_OK")
</pallas_src>

<mosaic_0001>
module attributes {stable_mosaic.version = 11 : i64} {
  func.func @kernel(%arg0: i32, %arg1: i32, %arg2: memref<4x128xf32, #tpu.memory_space<vmem>>, %arg3: memref<4x128xf32, #tpu.memory_space<vmem>>, %arg4: memref<1x128xf32, #tpu.memory_space<vmem>>, %arg5: memref<1x128xf32, #tpu.memory_space<vmem>>) attributes {dimension_semantics = [#tpu.dimension_semantics<parallel>, #tpu.dimension_semantics<arbitrary>], iteration_bounds = array<i64: 2, 1>, scalar_prefetch = 0 : i64, scratch_operands = 1 : i64, tpu.core_type = #tpu.core_type<tc>, window_params = [{transform_indices = @transform_0, window_bounds = array<i64: 4, 128>}, {transform_indices = @transform_1, window_bounds = array<i64: 4, 128>}, {transform_indices = @transform_2, window_bounds = array<i64: 1, 128>}]} {
    %c0_i32 = arith.constant 0 : i32
    %0 = arith.cmpi eq, %arg1, %c0_i32 : i32
    %1 = arith.extui %0 : i1 to i32
    %c0_i32_0 = arith.constant 0 : i32
    %2 = arith.cmpi ne, %1, %c0_i32_0 : i32
    scf.if %2 {
      %cst_13 = arith.constant 0.000000e+00 : f32
      %28 = vector.broadcast %cst_13 : f32 to vector<1x128xf32>
      %c0_14 = arith.constant 0 : index
      %c0_15 = arith.constant 0 : index
      %29 = vector.load %arg5[%c0_14, %c0_15] : memref<1x128xf32, #tpu.memory_space<vmem>>, vector<1x128xf32>
      tpu.vector_store %arg5[%c0_14, %c0_15], %28 {strides = array<i32>} : memref<1x128xf32, #tpu.memory_space<vmem>>, vector<1x128xf32>,
    } else {
    }
    %c0 = arith.constant 0 : index
    %c0_1 = arith.constant 0 : index
    %3 = vector.load %arg3[%c0, %c0_1] : memref<4x128xf32, #tpu.memory_space<vmem>>, vector<4x128xf32>
    %c0_2 = arith.constant 0 : index
    %c0_3 = arith.constant 0 : index
    %4 = vector.load %arg2[%c0_2, %c0_3] : memref<4x128xf32, #tpu.memory_space<vmem>>, vector<4x128xf32>
    %cst = arith.constant 2.000000e-01 : f32
    %5 = vector.broadcast %cst : f32 to vector<4x128xf32>
    %6 = arith.addf %3, %5 : vector<4x128xf32>
    %7 = arith.subf %3, %4 : vector<4x128xf32>
    %8 = math.absf %7 : vector<4x128xf32>
    %9 = arith.mulf %6, %8 : vector<4x128xf32>
    %c1_i32 = arith.constant 1 : i32
    %10 = arith.muli %arg0, %c1_i32 : i32
    %11 = arith.addi %10, %arg1 : i32
    %c4_i32 = arith.constant 4 : i32
    %12 = arith.muli %11, %c4_i32 : i32
    %13 = tpu.iota {dimensions = array<i32: 0>} : vector<4x128xi32>
    %14 = vector.broadcast %12 : i32 to vector<4x128xi32>
    %15 = arith.addi %14, %13 : vector<4x128xi32>
    %c4_i32_4 = arith.constant 4 : i32
    %16 = vector.broadcast %c4_i32_4 : i32 to vector<4x128xi32>
    %17 = arith.cmpi slt, %15, %16 : vector<4x128xi32>
    %cst_5 = arith.constant 0.000000e+00 : f32
    %18 = vector.broadcast %cst_5 : f32 to vector<4x128xf32>
    %19 = arith.select %17, %9, %18 : vector<4x128xi1>, vector<4x128xf32>
    %c0_6 = arith.constant 0 : index
    %c0_7 = arith.constant 0 : index
    %20 = vector.load %arg5[%c0_6, %c0_7] : memref<1x128xf32, #tpu.memory_space<vmem>>, vector<1x128xf32>
    %cst_8 = arith.constant dense<0.000000e+00> : vector<128xf32>
    %21 = vector.multi_reduction <add>, %19, %cst_8 [0] : vector<4x128xf32> to vector<128xf32>
    %22 = vector.shape_cast %21 : vector<128xf32> to vector<1x128xf32>
    %23 = arith.addf %20, %22 : vector<1x128xf32>
    %c0_9 = arith.constant 0 : index
    %c0_10 = arith.constant 0 : index
    %24 = vector.load %arg5[%c0_9, %c0_10] : memref<1x128xf32, #tpu.memory_space<vmem>>, vector<1x128xf32>
    tpu.vector_store %arg5[%c0_9, %c0_10], %23 {strides = array<i32>} : memref<1x128xf32, #tpu.memory_space<vmem>>, vector<1x128xf32>,
    %c0_i32_11 = arith.constant 0 : i32
    %25 = arith.cmpi eq, %arg1, %c0_i32_11 : i32
    %26 = arith.extui %25 : i1 to i32
    %c0_i32_12 = arith.constant 0 : i32
    %27 = arith.cmpi ne, %26, %c0_i32_12 : i32
    scf.if %27 {
      %c0_13 = arith.constant 0 : index
      %c0_14 = arith.constant 0 : index
      %28 = vector.load %arg5[%c0_13, %c0_14] : memref<1x128xf32, #tpu.memory_space<vmem>>, vector<1x128xf32>
      %c0_15 = arith.constant 0 : index
      %c0_16 = arith.constant 0 : index
      %29 = vector.load %arg4[%c0_15, %c0_16] : memref<1x128xf32, #tpu.memory_space<vmem>>, vector<1x128xf32>
      tpu.vector_store %arg4[%c0_15, %c0_16], %28 {strides = array<i32>} : memref<1x128xf32, #tpu.memory_space<vmem>>, vector<1x128xf32>,
    } else {
    }
    return
  }
  func.func @transform_0(%arg0: i32, %arg1: i32) -> (i32, i32) {
    %c1_i32 = arith.constant 1 : i32
    %0 = arith.muli %arg0, %c1_i32 : i32
    %1 = arith.addi %0, %arg1 : i32
    %c0_i32 = arith.constant 0 : i32
    %2 = arith.minsi %1, %c0_i32 : i32
    %c0_i32_0 = arith.constant 0 : i32
    %c0_i32_1 = arith.constant 0 : i32
    return %2, %c0_i32_0 : i32, i32
  }
  func.func @transform_1(%arg0: i32, %arg1: i32) -> (i32, i32) {
    %c1_i32 = arith.constant 1 : i32
    %0 = arith.muli %arg0, %c1_i32 : i32
    %1 = arith.addi %0, %arg1 : i32
    %c0_i32 = arith.constant 0 : i32
    %2 = arith.minsi %1, %c0_i32 : i32
    %c0_i32_0 = arith.constant 0 : i32
    %c0_i32_1 = arith.constant 0 : i32
    return %2, %c0_i32_0 : i32, i32
  }
  func.func @transform_2(%arg0: i32, %arg1: i32) -> (i32, i32) {
    %c0_i32 = arith.constant 0 : i32
    %c0_i32_0 = arith.constant 0 : i32
    return %c0_i32, %arg0 : i32, i32
  }
}

</mosaic_0001>

<bundles_post_ra>
// kernel: tpu_custom_call.1
= control target key start
LH: loop header
LB: loop body
LE: loop exit
PB: predicated region body
PF: predicated region fallthrough
CT: control target
= control target key end

     0   :  { %7 = vsyncpa [#allocation4], 0  ;;  %s873_s0 = inlined_call_operand.hbm [shape: f32[4,128], index: 0, kind: input, shape index: {}]   ;;  %s874_s1 = inlined_call_operand.hbm [shape: f32[4,128], index: 1, kind: input, shape index: {}]   ;;  %s875_s2 = inlined_call_operand.hbm [shape: f32[1,256], index: 2, kind: output, shape index: {}]  }
   0x1   :  { %9 = vsyncpa [#allocation4 + $0x1], 0 }
   0x2   :  { %10 = vsyncpa [#allocation7], 0 }
   0x3   :  { %12 = vsyncpa [#allocation7 + $0x1], 0 }
   0x4   :  { %13 = vsyncpa [#allocation5], 0 }
   0x5   :  { %15 = vsyncpa [#allocation5 + $0x1], 0  ;;  %s671_s9 = smov 0   ;;  %s673_s10 = smov 0  }
   0x6   :  { %s675_s11 = smov 0   ;;  %s677_s12 = smov 0  }
   0x7   :  { %s679_s13 = smov 0   ;;  %s681_s14 = smov 0  }
   0x8   :  { %s683_s15 = smov 0   ;;  %s685_s16 = smov 0  }
   0x9 LB: > { %s376_s17 = sadd.s32 4294967295, %s650_s16   ;;  %s377_s18 = sadd.s32 4294967294, %s650_s16   ;;  %s650_s16 = sphi %s685_s16, %s21_s16   ;;  %s646_s15 = sphi %s683_s15, %s896_s15   ;;  %s642_s14 = sphi %s681_s14, %s895_s14   ;;  %s638_s13 = sphi %s679_s13, %s863_s13   ;;  %s634_s12 = sphi %s677_s12, %s894_s12   ;;  %s630_s11 = sphi %s675_s11, %s893_s11   ;;  %s626_s10 = sphi %s673_s10, %s892_s10   ;;  %s622_s9 = sphi %s671_s9, %s891_s9  }
   0xa   : > { %s33_s19 = sadd.s32 1, %s646_s15  ;;  %p619_p1 = scmp.ne.s32.totalorder %s638_s13, 0 }
   0xb   : > { %p35_p0 = scmp.ge.s32.totalorder %s33_s19, 2  ;;  %p54_p2 = scmp.eq.s32.totalorder %s650_s16, 0 }
   0xc   : > { %p59_p3 = scmp.ne.s32.totalorder %s638_s13, %s634_s12  ;;  %p60_p5 = scmp.eq.s32.totalorder %s376_s17, 0 }
   0xd   : > { %s898_s19 = smov (%p35_p0, %s33_s19), 0  ;;  %p717_p4 = por %p619_p1, %p54_p2 }
   0xe   : > { %p721_p6 = por %p60_p5, %p59_p3  ;;  %s101_s22 = ssub.s32 %s646_s15, %s898_s19 }
   0xf   : > { %p102_p7 = scmp.eq.s32.totalorder %s101_s22, 0  ;;  %s104_s23 = sadd.s32 1, %s630_s11 }
  0x10   : > { %s879_s21 = scalar_select %p721_p6, 1, 0 }
  0x11   : > { %s729_s24 = scalar_select %p102_p7, %s630_s11, %s104_s23  }
  0x12   : > { %p114_p8 = scmp.ne.s32.totalorder %s630_s11, %s626_s10  ;;  %p115_p9 = scmp.eq.s32.totalorder %s376_s17, 1 }
  0x13   : > { %p120_p10 = scmp.ne.s32.totalorder %s626_s10, %s622_s9  ;;  %p121_p11 = scmp.eq.s32.totalorder %s377_s18, 1 }
  0x14   : > { %p735_p12 = por %p115_p9, %p114_p8  ;;  %p408_p1 = scmp.lt.s32.totalorder %s650_s16, 2 }
  0x15   : > { %p740_p0 = por %p121_p11, %p120_p10  ;;  %s652_s27 = smov [#allocation3]  }
  0x16   : > { %s880_s25 = scalar_select %p735_p12, 1, 0 }
  0x17   : > { %s881_s26 = scalar_select %p740_p0, 1, 0 }
  0x18   : > { %s155_s28 = sshll.u32 %s652_s27, 4  ;;  %p747_p2 = pnand %p408_p1, %p717_p4  ;;  %s156_s28 = int_to_ptr.vmem [resolvable:$true] %s155_s28 }
  0x19   : > { %s483_s4 = scalar_lea.hbm %s873_s0, 64 }
  0x1a   : > { %p484_p7 = scmp.ne.s32.totalorder %s873_s0, %s483_s4  ;;  %p485_p8 = pneg %p747_p2 }
  0x1b   : > { %p490_p10 = scmp.lt.u32.totalorder %s483_s4, %s483_s4  ;;  %p492_p11 = scmp.lt.u32.totalorder %s483_s4, %s873_s0 }
  0x1c   : > { %p486_p4 = pnand %p485_p8, %p484_p7 }
  0x1d   : > { %p493_p1 = por %p492_p11, %p490_p10 }
  0x1e   : > { %p487_p9 = pneg %p486_p4 }
  0x20   : > { %p494_p13 = pnand %p493_p1, %p487_p9 }
  0x22   : > { %497 = shalt.err (!%p494_p13)
}
  0x23   : > { %s498_s12 = scalar_lea.vmem %s156_s28, 64  ;;  %s505_s17 = scalar_lea.vmem %s156_s28, 128 }
  0x24   : > { %p499_p3 = scmp.ne.s32.totalorder %s156_s28, %s498_s12  ;;  %p506_p12 = scmp.lt.s32.totalorder %s156_s28, %s156_s28 }
  0x25   : > { %p507_p6 = scmp.lt.s32.totalorder %s505_s17, %s498_s12 }
  0x26   : > { %p501_p5 = pnand %p499_p3, %p485_p8 }
  0x27   : > { %p508_p7 = por %p507_p6, %p506_p12 }
  0x28   : > { %p502_p0 = pneg %p501_p5 }
  0x2a   : > { %p509_p4 = pnand %p508_p7, %p502_p0 }
  0x2c   : > { %512 = shalt.err (!%p509_p4)
}
  0x2d   : > { %400 = dma.hbm_to_vmem [thread:$0]  (!%p747_p2), %s873_s0, 64, %s156_s28, [#allocation4]  }
  0x2e   : > { %p883_p13 = scmp.lt.s32.totalorder %s650_s16, 3  ;;  %p884_p9 = scmp.ge.s32.totalorder %s650_s16, 1 }
  0x2f   : > { %s653_s23 = smov [#allocation6]   ;;  %s513_s4 = scalar_lea.hbm %s874_s1, 64 }
  0x30   : > { %p779_p10 = pnand %p884_p9, %p883_p13  ;;  %s176_s27 = sshll.u32 %s653_s23, 4  ;;  %s177_s27 = int_to_ptr.vmem [resolvable:$true] %s176_s27 }
  0x31   : > { %p514_p6 = scmp.ne.s32.totalorder %s874_s1, %s513_s4  ;;  %p520_p3 = scmp.lt.u32.totalorder %s513_s4, %s513_s4 }
  0x32   : > { %s885_s22 = scalar_select %p779_p10, 1, 0 }
  0x33   : > { %p516_p12 = pnand %p514_p6, %p485_p8  ;;  %p522_p5 = scmp.lt.u32.totalorder %s513_s4, %s874_s1 }
  0x35   : > { %p517_p0 = pneg %p516_p12  ;;  %p523_p11 = por %p522_p5, %p520_p3 }
  0x37   : > { %p524_p1 = pnand %p523_p11, %p517_p0 }
  0x39   : > { %527 = shalt.err (!%p524_p1)
}
  0x3a   : > { %s528_s8 = scalar_lea.vmem %s177_s27, 64  ;;  %s535_s12 = scalar_lea.vmem %s177_s27, 128 }
  0x3b   : > { %p529_p7 = scmp.ne.s32.totalorder %s177_s27, %s528_s8  ;;  %p536_p9 = scmp.lt.s32.totalorder %s177_s27, %s177_s27 }
  0x3c   : > { %p537_p10 = scmp.lt.s32.totalorder %s535_s12, %s528_s8 }
  0x3d   : > { %p531_p4 = pnand %p529_p7, %p485_p8 }
  0x3e   : > { %p538_p6 = por %p537_p10, %p536_p9 }
  0x3f   : > { %p532_p13 = pneg %p531_p4 }
  0x41   : > { %p539_p12 = pnand %p538_p6, %p532_p13 }
  0x43   : > { %542 = shalt.err (!%p539_p12)
}
  0x44   : > { %403 = dma.hbm_to_vmem [thread:$0]  (!%p747_p2), %s874_s1, 64, %s177_s27, [#allocation7]  }
  0x45   : > { %p886_p0 = scmp.ne.s32.totalorder %s885_s22, 0 }
  0x46   : > { %s187_s20 = sand.u32 (!%p886_p0), 1, %s638_s13   ;;  %p887_p8 = scmp.ne.s32.totalorder (!%p886_p0), %s879_s21, 0 }
  0x47   : > { %185 = sbr.rel (%p886_p0) target bundleno = 127 (0x7f), region = 28  ;;  %s385_s23 = sshll.u32 (!%p886_p0), %s187_s20, 2 }
  0x48   : > { %s188_s30 = scalar_lea.sflag (!%p886_p0), [#allocation4], %s187_s20  ;;  %s191_s3 = scalar_lea.vmem (!%p886_p0), [#allocation3], %s385_s23 }
  0x4e   : > { %608 = dma.done.wait (%p887_p8), %s188_s30, 64  }
  0x4f   : > { %610 = vsyncadd (%p887_p8), %s188_s30, 4294967232  ;;  %s197_s29 = scalar_lea.sflag [#allocation7], %s187_s20  ;;  %s200_s4 = scalar_lea.vmem [#allocation6], %s385_s23 }
  0x50   : > { %612 = dma.done.wait (%p887_p8), %s197_s29, 64  }
  0x51   : > { %614 = vsyncadd (%p887_p8), %s197_s29, 4294967232  ;;  %v244_v0 = vlaneseq  ;;  %v654_v1 = vmov 0.0   ;;  %s387_s22 = sshll.u32 %s642_s14, 2  ;;  %v236_v4 = vld [vmem:[%s200_s4] sm:$0xf]  ;;  %vm251_vm1 = vcmask 1043456  }
  0x52   : > { %235 = vst [vmem:[#allocation2] sm:$0x1] %v654_v1  ;;  %v246_v3 = vstv %s387_s22  ;;  %v237_v5 = vld [vmem:[%s191_s3] sm:$0xf]  ;;  %v238_v7 = vadd.f32 0.2, %v236_v4 }
  0x53   : > { %v245_v2 = vshrl.u32 %v244_v0, 7  ;;  %v239_v8 = vsub.f32 %v236_v4, %v237_v5  ;;  %s223_s21 = sand.u32 1, %s626_s10   ;;  %s388_s6 = sshll.u32 %s642_s14, 4 }
  0x54   : > { %s224_s27 = scalar_lea.vmem [#allocation8], %s223_s21  ;;  %s822_s8 = scalar_lea.hbm %s875_s2, %s388_s6 }
  0x55   : > { %v247_v6 = vadd.s32 %v246_v3, %v245_v2  ;;  %v240_v9 = vand.u32 2147483647, %v239_v8  ;;  %s279_s5 = sshll.u32 %s224_s27, 4  ;;  %s267_s12 = scalar_lea.sflag [#allocation5], %s223_s21  ;;  %s817_s5 = int_to_ptr.vmem [resolvable:$true] %s279_s5 }
  0x56   : > { %s543_s17 = scalar_lea.vmem %s817_s5, 16  ;;  %p888_p10 = scmp.ne.s32.totalorder %s880_s25, 0 }
  0x57   : > { %vm248_vm0 = vcmp.lt.s32.totalorder %v247_v6, 4  ;;  %v241_v10 = vmul.f32 %v240_v9, %v238_v7  ;;  %p544_p2 = scmp.ne.s32.totalorder %s817_s5, %s543_s17  ;;  %s655_s18 = smov [#allocation8]  }
  0x58   : > { %s547_s14 = sshll.u32 %s655_s18, 4  ;;  %s548_s14 = int_to_ptr.vmem [resolvable:$false] %s547_s14 }
  0x59   : > { %v249_v11 = vsel %vm248_vm0, %v241_v10, 0.0  ;;  %v250_v18 = vld [vmem:[#allocation2] sm:$0x1]  ;;  %p545_p3 = pnand %p544_p2, %p888_p10  ;;  %s549_s20 = scalar_lea.vmem %s548_s14, 32 }
  0x5a   : > { %v252_v12 = vsel %vm251_vm1, %v249_v11, 0.0  ;;  %p550_p11 = scmp.lt.s32.totalorder %s817_s5, %s548_s14  ;;  %p551_p1 = scmp.lt.s32.totalorder %s549_s20, %s543_s17 }
  0x5b   : > { %v253_v13 = vrot.slane %v252_v12, 4  ;;  %p546_p5 = pneg %p545_p3 }
  0x5c   : > { %p552_p7 = por %p551_p1, %p550_p11 }
  0x5d   : > { %v254_v14 = vadd.f32 %v253_v13, %v252_v12 }
  0x5e   : > { %p553_p4 = pnand %p552_p7, %p546_p5 }
  0x5f   : > { %v255_v15 = vrot.slane %v254_v14, 2 }
  0x61   : > { %v256_v16 = vadd.f32 %v255_v15, %v254_v14 }
  0x63   : > { %v257_v17 = vrot.slane %v256_v16, 1 }
  0x65   : > { %v258_v19 = vadd.f32 %v257_v17, %v256_v16 }
  0x67   : > { %v259_v20 = vadd.f32 %v258_v19, %v250_v18 }
  0x69   : > { %260 = vst [vmem:[#allocation2] sm:$0x1] %v259_v20 }
  0x70   : > { %v264_v21 = vld [vmem:[#allocation2] sm:$0x1] }
  0x71   : > { %265 = vst [vmem:[%s224_s27] sm:$0x1] %v264_v21 }
  0x72   : > { %556 = shalt.err (!%p553_p4)
}
  0x73   : > { %s557_s23 = scalar_lea.hbm %s822_s8, 16  ;;  %s561_s29 = scalar_lea.hbm %s875_s2, 32 }
  0x74   : > { %p558_p13 = scmp.ne.s32.totalorder %s822_s8, %s557_s23  ;;  %p562_p12 = scmp.lt.u32.totalorder %s822_s8, %s875_s2 }
  0x75   : > { %p563_p0 = scmp.lt.u32.totalorder %s561_s29, %s557_s23  ;;  %p565_p2 = scmp.lt.u32.totalorder %s557_s23, %s822_s8 }
  0x76   : > { %p559_p9 = pnand %p558_p13, %p888_p10 }
  0x77   : > { %p564_p8 = por %p563_p0, %p562_p12 }
  0x78   : > { %p560_p6 = pneg %p559_p9 }
  0x79   : > { %p566_p3 = por %p565_p2, %p564_p8 }
  0x7b   : > { %p567_p5 = pnand %p566_p3, %p560_p6 }
  0x7d   : > { %570 = shalt.err (!%p567_p5)
}
  0x7e   : > { %395 = dma.vmem_to_hbm [thread:$0]  (%p888_p10), %s817_s5, 16, %s822_s8, %s267_s12  }
  0x7f PF: > { %s291_s21 = sand.u32 1, %s622_s9   ;;  %p889_p11 = scmp.ne.s32.totalorder %s881_s26, 0 }
  0x80   : > { %p890_p1 = scmp.ge.s32.totalorder %s650_s16, 2  ;;  %s292_s27 = scalar_lea.sflag [#allocation5], %s291_s21 }
  0x82   : > { %p405_p7 = pnand %p890_p1, %p889_p11 }
  0x84   : > { %616 = dma.done.wait (!%p405_p7), %s292_s27, 16  }
  0x85   : > { %618 = vsyncadd (!%p405_p7), %s292_s27, 4294967280  ;;  %s21_s16 = sadd.s32 1, %s650_s16   ;;  %s891_s9 = smov %s626_s10 }
  0x86   : > { %p18_p4 = scmp.ge.s32.totalorder %s21_s16, 4   ;;  %s892_s10 = smov %s630_s11 }
  0x87   : > { %s893_s11 = smov %s729_s24  ;;  %s894_s12 = smov %s638_s13 }
  0x88   : > { %s863_s13 = smov 0   ;;  %s895_s14 = smov %s646_s15 }
  0x89   : > { %s896_s15 = smov %s898_s19  ;;  %20 = sbr.rel (!%p18_p4) target bundleno = 9 (0x9), region = 94 }
  0x90   :  { %296 = vsyncpa [#allocation4], 1 }
  0x91   :  { %298 = vsyncpa [#allocation4 + $0x1], 1 }
  0x92   :  { %299 = vsyncpa [#allocation7], 1 }
  0x93   :  { %301 = vsyncpa [#allocation7 + $0x1], 1 }
  0x94   :  { %302 = vsyncpa [#allocation5], 1 }
  0x95   :  { %304 = vsyncpa [#allocation5 + $0x1], 1 }

</bundles_post_ra>
